<compile_context>
chip_gen: v6e
topology: v6e:2x2x1
jax: 0.10.0
libtpu: 0.0.40
codegen_flags: <defaults>
</compile_context>

<pallas_src>
import functools

import jax
import jax.numpy as jnp
from jax import lax
from jax.experimental import pallas as pl
from jax.experimental.pallas import tpu as pltpu


# ----------------------------- recurrent kernel ------------------------------

def _lstm_recurrent_kernel(gx_ref, whh_ref, h_all_ref, hN_ref, cN_ref,
                           h_scr, c_scr, *, hidden_size, t_chunk):
    H = hidden_size
    t_idx = pl.program_id(1)

    @pl.when(t_idx == 0)
    def _():
        h_scr[...] = jnp.zeros_like(h_scr)
        c_scr[...] = jnp.zeros_like(c_scr)

    whh = whh_ref[...]                                    # (H, 4H) bf16, resident

    def step(t, carry):
        h_prev, c_prev = carry
        # gates_x already holds x_t @ W_ih^T + (b_ih + b_hh); only the recurrent
        # (tb, H) @ (H, 4H) matmul remains on the serial dependency chain.
        gates = gx_ref[t] + jnp.dot(h_prev.astype(jnp.bfloat16), whh,
                                    preferred_element_type=jnp.float32)
        # NOTE: for realistic configs H is a multiple of 128, so these lane slices
        # are aligned; at the toy H=32 they only incur a small relayout.
        i_g = jax.nn.sigmoid(gates[:, 0 * H:1 * H])
        f_g = jax.nn.sigmoid(gates[:, 1 * H:2 * H])
        g_g = jnp.tanh(gates[:, 2 * H:3 * H])
        o_g = jax.nn.sigmoid(gates[:, 3 * H:4 * H])
        c_new = f_g * c_prev + i_g * g_g
        h_new = o_g * jnp.tanh(c_new)
        h_all_ref[t] = h_new
        return h_new, c_new

    h_last, c_last = lax.fori_loop(0, t_chunk, step,
                                   (h_scr[...], c_scr[...]), unroll=True)
    h_scr[...] = h_last
    c_scr[...] = c_last

    # Final state: write once, on the last time chunk only (avoids per-step stores
    # into the resident output block).
    @pl.when(t_idx == pl.num_programs(1) - 1)
    def _():
        hN_ref[0] = h_last
        cN_ref[0] = c_last


# ------------------------------ decoder kernel -------------------------------

def _decoder_kernel(h_ref, wdec_ref, bdec_ref, out_ref):
    h = h_ref[...].astype(jnp.bfloat16)                   # (m_tile, H)
    out_ref[...] = (jnp.dot(h, wdec_ref[...], preferred_element_type=jnp.float32)
                    + bdec_ref[...]).astype(out_ref.dtype)


# --------------------------------- helpers -----------------------------------

def _pick_tile(n, candidates):
    for c in candidates:
        if n % c == 0:
            return c
    return n


def _largest_divisor_leq(n, cap):
    for d in range(min(n, cap), 0, -1):
        if n % d == 0:
            return d
    return 1


# --------------------------------- wrapper -----------------------------------

def rnn_model_forward(tokens, w_ih, w_hh, b_ih, b_hh, w_dec, b_dec, *, t_chunk=8):
    """tokens: (L, B) int. Weights in PyTorch layout:
       w_ih (4H, V), w_hh (4H, H), b_ih/b_hh (4H,), w_dec (V, H), b_dec (V,)."""
    L, B = tokens.shape
    four_h, V = w_ih.shape
    H = four_h // 4

    # ---- parallel glue (outside the serial recurrence) -----------------------
    # one_hot(tokens) @ W_ih^T  ==  row gather of W_ih^T; fold both biases in.
    wih_t = jnp.asarray(w_ih, jnp.float32).T                              # (V, 4H)
    bias = jnp.asarray(b_ih, jnp.float32) + jnp.asarray(b_hh, jnp.float32)
    gates_x = jnp.take(wih_t, tokens, axis=0) + bias                      # (L, B, 4H)

    whh_bf16 = jnp.asarray(w_hh, jnp.float32).T.astype(jnp.bfloat16)      # (H, 4H)
    wdec_bf16 = jnp.asarray(w_dec, jnp.float32).T.astype(jnp.bfloat16)    # (H, V)
    bdec = jnp.asarray(b_dec, jnp.float32).reshape(1, V)

    # pad batch to a sublane multiple (padded rows compute exact zeros, sliced off).
    b_pad = max(8, ((B + 7) // 8) * 8)
    if b_pad != B:
        gates_x = jnp.pad(gates_x, ((0, 0), (0, b_pad - B), (0, 0)))

    # time chunking (amortize per-grid-step overhead); chunk must divide L.
    tc = _largest_divisor_leq(L, max(1, t_chunk))
    tb = _pick_tile(b_pad, (256, 128, 64, 32, 16, 8))

    rec_kernel = functools.partial(_lstm_recurrent_kernel,
                                   hidden_size=H, t_chunk=tc)
    h_all, h_n, c_n = pl.pallas_call(
        rec_kernel,
        out_shape=(
            jax.ShapeDtypeStruct((L, b_pad, H), jnp.float32),    # all hidden states
            jax.ShapeDtypeStruct((1, b_pad, H), jnp.float32),    # h_n
            jax.ShapeDtypeStruct((1, b_pad, H), jnp.float32),    # c_n
        ),
        grid_spec=pltpu.PrefetchScalarGridSpec(
            num_scalar_prefetch=0,
            grid=(b_pad // tb, L // tc),
            in_specs=[
                pl.BlockSpec((tc, tb, 4 * H), lambda b, t: (t, b, 0)),   # gates_x
                pl.BlockSpec((H, 4 * H), lambda b, t: (0, 0)),           # W_hh^T (bf16)
            ],
            out_specs=[
                pl.BlockSpec((tc, tb, H), lambda b, t: (t, b, 0)),       # h_t per chunk
                pl.BlockSpec((1, tb, H), lambda b, t: (0, b, 0)),        # h_n
                pl.BlockSpec((1, tb, H), lambda b, t: (0, b, 0)),        # c_n
            ],
            scratch_shapes=[
                pltpu.VMEM((tb, H), jnp.float32),                        # h carry
                pltpu.VMEM((tb, H), jnp.float32),                        # c carry
            ],
        ),
        compiler_params=pltpu.CompilerParams(
            # batch tiles are independent (megacore-shardable); time is a recurrence.
            dimension_semantics=("parallel", "arbitrary"),
        ),
    )(gates_x, whh_bf16)

    # ---- decoder: fully parallel batched matmul over all (L * B) rows --------
    # TODO(synk): nn.Dropout(0.2) is identity in eval mode; training-mode mask not applied.
    m = L * b_pad
    h_flat = h_all.reshape(m, H)
    m_tile = _pick_tile(m, (512, 256, 128, 64, 32, 16, 8))
    v_tile = _pick_tile(V, (512, 256, 128)) if V % 128 == 0 else V

    logits = pl.pallas_call(
        _decoder_kernel,
        out_shape=jax.ShapeDtypeStruct((m, V), jnp.float32),
        grid_spec=pltpu.PrefetchScalarGridSpec(
            num_scalar_prefetch=0,
            grid=(m // m_tile, V // v_tile),
            in_specs=[
                pl.BlockSpec((m_tile, H), lambda i, j: (i, 0)),          # hidden rows
                pl.BlockSpec((H, v_tile), lambda i, j: (0, j)),          # W_dec^T (bf16)
                pl.BlockSpec((1, v_tile), lambda i, j: (0, j)),          # b_dec
            ],
            out_specs=pl.BlockSpec((m_tile, v_tile), lambda i, j: (i, j)),
        ),
        compiler_params=pltpu.CompilerParams(
            dimension_semantics=("parallel", "parallel"),
        ),
    )(h_flat, wdec_bf16, bdec)

    outputs = logits.reshape(L, b_pad, V)[:, :B, :]
    return outputs, (h_n[:, :B, :], c_n[:, :B, :])


# -------------------------------- reference ----------------------------------

def _reference_forward(x_onehot, w_ih, w_hh, b_ih, b_hh, w_dec, b_dec):
    """Pure-JAX f32 reference (PyTorch LSTM semantics) for correctness checking."""
    L, B, V = x_onehot.shape
    H = w_hh.shape[1]

    def step(carry, x_t):
        h, c = carry
        gates = x_t @ w_ih.T + b_ih + h @ w_hh.T + b_hh
        i = jax.nn.sigmoid(gates[:, 0 * H:1 * H])
        f = jax.nn.sigmoid(gates[:, 1 * H:2 * H])
        g = jnp.tanh(gates[:, 2 * H:3 * H])
        o = jax.nn.sigmoid(gates[:, 3 * H:4 * H])
        c_new = f * c + i * g
        h_new = o * jnp.tanh(c_new)
        return (h_new, c_new), h_new

    (h_n, c_n), hs = lax.scan(step,
                              (jnp.zeros((B, H)), jnp.zeros((B, H))),
                              x_onehot)
    logits = hs @ w_dec.T + b_dec
    return logits, (h_n[None], c_n[None])


if __name__ == "__main__":
    # Small shapes consistent with the module: seq L=8, batch B=2,
    # vocab_size V=32, hidden_size H=32, nlayers=1.
    L, B, V, H = 8, 2, 32, 32

    key = jax.random.PRNGKey(0)
    k_tok, k_wih, k_whh, k_bih, k_bhh, k_wd = jax.random.split(key, 6)

    tokens = jax.random.randint(k_tok, (L, B), 0, V)           # (L, B) int tokens

    initrange = 0.1
    w_ih = jax.random.uniform(k_wih, (4 * H, V), minval=-initrange, maxval=initrange)
    w_hh = jax.random.uniform(k_whh, (4 * H, H), minval=-initrange, maxval=initrange)
    b_ih = jax.random.uniform(k_bih, (4 * H,), minval=-initrange, maxval=initrange)
    b_hh = jax.random.uniform(k_bhh, (4 * H,), minval=-initrange, maxval=initrange)
    w_dec = jax.random.uniform(k_wd, (V, H), minval=-initrange, maxval=initrange)
    b_dec = jnp.zeros((V,), jnp.float32)                        # decoder.bias.zero_()

    # t_chunk=4 with L=8 -> 2 time chunks: exercises both the in-kernel unrolled loop
    # and the cross-grid-step h/c carry.
    out, (h_n, c_n) = rnn_model_forward(tokens, w_ih, w_hh, b_ih, b_hh, w_dec, b_dec,
                                        t_chunk=4)
    jax.block_until_ready(out)

    x_onehot = jax.nn.one_hot(tokens, V, dtype=jnp.float32)     # tokensToTensors
    ref_out, (ref_h, ref_c) = _reference_forward(x_onehot, w_ih, w_hh, b_ih, b_hh,
                                                 w_dec, b_dec)
    assert out.shape == (L, B, V) and h_n.shape == (1, B, H) and c_n.shape == (1, B, H)
    # bf16 matmul operands (f32 accumulation) -> looser tolerance than pure f32.
    assert jnp.allclose(out, ref_out, atol=1e-2, rtol=1e-2)
    assert jnp.allclose(h_n, ref_h, atol=1e-2, rtol=1e-2)
    assert jnp.allclose(c_n, ref_c, atol=1e-2, rtol=1e-2)

    print("KERNEL_OK")
</pallas_src>

<mosaic_0001>
module attributes {stable_mosaic.version = 11 : i64} {
  func.func @_lstm_recurrent_kernel(%arg0: i32, %arg1: i32, %arg2: memref<4x8x128xf32, #tpu.memory_space<vmem>>, %arg3: memref<32x128xbf16, #tpu.memory_space<vmem>>, %arg4: memref<4x8x32xf32, #tpu.memory_space<vmem>>, %arg5: memref<1x8x32xf32, #tpu.memory_space<vmem>>, %arg6: memref<1x8x32xf32, #tpu.memory_space<vmem>>, %arg7: memref<8x32xf32, #tpu.memory_space<vmem>>, %arg8: memref<8x32xf32, #tpu.memory_space<vmem>>) attributes {dimension_semantics = [#tpu.dimension_semantics<parallel>, #tpu.dimension_semantics<arbitrary>], iteration_bounds = array<i64: 1, 2>, scalar_prefetch = 0 : i64, scratch_operands = 2 : i64, tpu.core_type = #tpu.core_type<tc>, window_params = [{transform_indices = @transform_0, window_bounds = array<i64: 4, 8, 128>}, {pipeline_mode = #tpu.pipeline_mode<synchronous>, transform_indices = @transform_1, window_bounds = array<i64: 32, 128>}, {transform_indices = @transform_2, window_bounds = array<i64: 4, 8, 32>}, {transform_indices = @transform_3, window_bounds = array<i64: 1, 8, 32>}, {transform_indices = @transform_4, window_bounds = array<i64: 1, 8, 32>}]} {
    %c0_i32 = arith.constant 0 : i32
    %0 = arith.cmpi eq, %arg1, %c0_i32 : i32
    %1 = arith.extui %0 : i1 to i32
    %c0_i32_0 = arith.constant 0 : i32
    %2 = arith.cmpi ne, %1, %c0_i32_0 : i32
    scf.if %2 {
      %cst_44 = arith.constant 0.000000e+00 : f32
      %151 = vector.broadcast %cst_44 : f32 to vector<8x32xf32>
      %c0_45 = arith.constant 0 : index
      %c0_46 = arith.constant 0 : index
      %152 = vector.load %arg7[%c0_45, %c0_46] : memref<8x32xf32, #tpu.memory_space<vmem>>, vector<8x32xf32>
      tpu.vector_store %arg7[%c0_45, %c0_46], %151 {strides = array<i32>} : memref<8x32xf32, #tpu.memory_space<vmem>>, vector<8x32xf32>,
      %cst_47 = arith.constant 0.000000e+00 : f32
      %153 = vector.broadcast %cst_47 : f32 to vector<8x32xf32>
      %c0_48 = arith.constant 0 : index
      %c0_49 = arith.constant 0 : index
      %154 = vector.load %arg8[%c0_48, %c0_49] : memref<8x32xf32, #tpu.memory_space<vmem>>, vector<8x32xf32>
      tpu.vector_store %arg8[%c0_48, %c0_49], %153 {strides = array<i32>} : memref<8x32xf32, #tpu.memory_space<vmem>>, vector<8x32xf32>,
    } else {
    }
    %c0 = arith.constant 0 : index
    %c0_1 = arith.constant 0 : index
    %3 = vector.load %arg3[%c0, %c0_1] : memref<32x128xbf16, #tpu.memory_space<vmem>>, vector<32x128xbf16>
    %c0_2 = arith.constant 0 : index
    %c0_3 = arith.constant 0 : index
    %4 = vector.load %arg7[%c0_2, %c0_3] : memref<8x32xf32, #tpu.memory_space<vmem>>, vector<8x32xf32>
    %c0_4 = arith.constant 0 : index
    %c0_5 = arith.constant 0 : index
    %5 = vector.load %arg8[%c0_4, %c0_5] : memref<8x32xf32, #tpu.memory_space<vmem>>, vector<8x32xf32>
    %c0_i32_6 = arith.constant 0 : i32
    %6 = arith.index_cast %c0_i32_6 : i32 to index
    %c0_7 = arith.constant 0 : index
    %c0_8 = arith.constant 0 : index
    %7 = vector.load %arg2[%6, %c0_7, %c0_8] : memref<4x8x128xf32, #tpu.memory_space<vmem>>, vector<1x8x128xf32>
    %8 = vector.shape_cast %7 : vector<1x8x128xf32> to vector<8x128xf32>
    %9 = arith.truncf %4 : vector<8x32xf32> to vector<8x32xbf16>
    %cst = arith.constant dense<0.000000e+00> : vector<8x128xf32>
    %10 = tpu.matmul %9, %3, %cst {dimension_numbers = #tpu.dot_dimension_numbers<[1], [0], [0], [1], [0, 0, 1, 1], [], []>} : vector<8x32xbf16>, vector<32x128xbf16>, vector<8x128xf32> -> vector<8x128xf32>
    %11 = arith.addf %8, %10 : vector<8x128xf32>
    %12 = vector.extract_strided_slice %11 {offsets = [0, 0], sizes = [8, 32], strides = [1, 1]} : vector<8x128xf32> to vector<8x32xf32>
    %13 = arith.negf %12 : vector<8x32xf32>
    %14 = math.exp %13 : vector<8x32xf32>
    %cst_9 = arith.constant 1.000000e+00 : f32
    %15 = vector.broadcast %cst_9 : f32 to vector<8x32xf32>
    %16 = arith.addf %15, %14 : vector<8x32xf32>
    %17 = arith.divf %15, %16 : vector<8x32xf32>
    %18 = vector.extract_strided_slice %11 {offsets = [0, 32], sizes = [8, 32], strides = [1, 1]} : vector<8x128xf32> to vector<8x32xf32>
    %19 = arith.negf %18 : vector<8x32xf32>
    %20 = math.exp %19 : vector<8x32xf32>
    %cst_10 = arith.constant 1.000000e+00 : f32
    %21 = vector.broadcast %cst_10 : f32 to vector<8x32xf32>
    %22 = arith.addf %21, %20 : vector<8x32xf32>
    %23 = arith.divf %21, %22 : vector<8x32xf32>
    %24 = vector.extract_strided_slice %11 {offsets = [0, 64], sizes = [8, 32], strides = [1, 1]} : vector<8x128xf32> to vector<8x32xf32>
    %25 = math.tanh %24 : vector<8x32xf32>
    %26 = vector.extract_strided_slice %11 {offsets = [0, 96], sizes = [8, 32], strides = [1, 1]} : vector<8x128xf32> to vector<8x32xf32>
    %27 = arith.negf %26 : vector<8x32xf32>
    %28 = math.exp %27 : vector<8x32xf32>
    %cst_11 = arith.constant 1.000000e+00 : f32
    %29 = vector.broadcast %cst_11 : f32 to vector<8x32xf32>
    %30 = arith.addf %29, %28 : vector<8x32xf32>
    %31 = arith.divf %29, %30 : vector<8x32xf32>
    %32 = arith.mulf %23, %5 : vector<8x32xf32>
    %33 = arith.mulf %17, %25 : vector<8x32xf32>
    %34 = arith.addf %32, %33 : vector<8x32xf32>
    %35 = math.tanh %34 : vector<8x32xf32>
    %36 = arith.mulf %31, %35 : vector<8x32xf32>
    %37 = arith.index_cast %c0_i32_6 : i32 to index
    %c0_12 = arith.constant 0 : index
    %c0_13 = arith.constant 0 : index
    %38 = vector.load %arg4[%37, %c0_12, %c0_13] : memref<4x8x32xf32, #tpu.memory_space<vmem>>, vector<1x8x32xf32>
    %39 = vector.shape_cast %38 : vector<1x8x32xf32> to vector<8x32xf32>
    %40 = vector.shape_cast %36 : vector<8x32xf32> to vector<1x8x32xf32>
    tpu.vector_store %arg4[%37, %c0_12, %c0_13], %40 {strides = array<i32>} : memref<4x8x32xf32, #tpu.memory_space<vmem>>, vector<1x8x32xf32>,
    %c1_i32 = arith.constant 1 : i32
    %41 = arith.index_cast %c1_i32 : i32 to index
    %c0_14 = arith.constant 0 : index
    %c0_15 = arith.constant 0 : index
    %42 = vector.load %arg2[%41, %c0_14, %c0_15] : memref<4x8x128xf32, #tpu.memory_space<vmem>>, vector<1x8x128xf32>
    %43 = vector.shape_cast %42 : vector<1x8x128xf32> to vector<8x128xf32>
    %44 = arith.truncf %36 : vector<8x32xf32> to vector<8x32xbf16>
    %cst_16 = arith.constant dense<0.000000e+00> : vector<8x128xf32>
    %45 = tpu.matmul %44, %3, %cst_16 {dimension_numbers = #tpu.dot_dimension_numbers<[1], [0], [0], [1], [0, 0, 1, 1], [], []>} : vector<8x32xbf16>, vector<32x128xbf16>, vector<8x128xf32> -> vector<8x128xf32>
    %46 = arith.addf %43, %45 : vector<8x128xf32>
    %47 = vector.extract_strided_slice %46 {offsets = [0, 0], sizes = [8, 32], strides = [1, 1]} : vector<8x128xf32> to vector<8x32xf32>
    %48 = arith.negf %47 : vector<8x32xf32>
    %49 = math.exp %48 : vector<8x32xf32>
    %cst_17 = arith.constant 1.000000e+00 : f32
    %50 = vector.broadcast %cst_17 : f32 to vector<8x32xf32>
    %51 = arith.addf %50, %49 : vector<8x32xf32>
    %52 = arith.divf %50, %51 : vector<8x32xf32>
    %53 = vector.extract_strided_slice %46 {offsets = [0, 32], sizes = [8, 32], strides = [1, 1]} : vector<8x128xf32> to vector<8x32xf32>
    %54 = arith.negf %53 : vector<8x32xf32>
    %55 = math.exp %54 : vector<8x32xf32>
    %cst_18 = arith.constant 1.000000e+00 : f32
    %56 = vector.broadcast %cst_18 : f32 to vector<8x32xf32>
    %57 = arith.addf %56, %55 : vector<8x32xf32>
    %58 = arith.divf %56, %57 : vector<8x32xf32>
    %59 = vector.extract_strided_slice %46 {offsets = [0, 64], sizes = [8, 32], strides = [1, 1]} : vector<8x128xf32> to vector<8x32xf32>
    %60 = math.tanh %59 : vector<8x32xf32>
    %61 = vector.extract_strided_slice %46 {offsets = [0, 96], sizes = [8, 32], strides = [1, 1]} : vector<8x128xf32> to vector<8x32xf32>
    %62 = arith.negf %61 : vector<8x32xf32>
    %63 = math.exp %62 : vector<8x32xf32>
    %cst_19 = arith.constant 1.000000e+00 : f32
    %64 = vector.broadcast %cst_19 : f32 to vector<8x32xf32>
    %65 = arith.addf %64, %63 : vector<8x32xf32>
    %66 = arith.divf %64, %65 : vector<8x32xf32>
    %67 = arith.mulf %58, %34 : vector<8x32xf32>
    %68 = arith.mulf %52, %60 : vector<8x32xf32>
    %69 = arith.addf %67, %68 : vector<8x32xf32>
    %70 = math.tanh %69 : vector<8x32xf32>
    %71 = arith.mulf %66, %70 : vector<8x32xf32>
    %72 = arith.index_cast %c1_i32 : i32 to index
    %c0_20 = arith.constant 0 : index
    %c0_21 = arith.constant 0 : index
    %73 = vector.load %arg4[%72, %c0_20, %c0_21] : memref<4x8x32xf32, #tpu.memory_space<vmem>>, vector<1x8x32xf32>
    %74 = vector.shape_cast %73 : vector<1x8x32xf32> to vector<8x32xf32>
    %75 = vector.shape_cast %71 : vector<8x32xf32> to vector<1x8x32xf32>
    tpu.vector_store %arg4[%72, %c0_20, %c0_21], %75 {strides = array<i32>} : memref<4x8x32xf32, #tpu.memory_space<vmem>>, vector<1x8x32xf32>,
    %c2_i32 = arith.constant 2 : i32
    %76 = arith.index_cast %c2_i32 : i32 to index
    %c0_22 = arith.constant 0 : index
    %c0_23 = arith.constant 0 : index
    %77 = vector.load %arg2[%76, %c0_22, %c0_23] : memref<4x8x128xf32, #tpu.memory_space<vmem>>, vector<1x8x128xf32>
    %78 = vector.shape_cast %77 : vector<1x8x128xf32> to vector<8x128xf32>
    %79 = arith.truncf %71 : vector<8x32xf32> to vector<8x32xbf16>
    %cst_24 = arith.constant dense<0.000000e+00> : vector<8x128xf32>
    %80 = tpu.matmul %79, %3, %cst_24 {dimension_numbers = #tpu.dot_dimension_numbers<[1], [0], [0], [1], [0, 0, 1, 1], [], []>} : vector<8x32xbf16>, vector<32x128xbf16>, vector<8x128xf32> -> vector<8x128xf32>
    %81 = arith.addf %78, %80 : vector<8x128xf32>
    %82 = vector.extract_strided_slice %81 {offsets = [0, 0], sizes = [8, 32], strides = [1, 1]} : vector<8x128xf32> to vector<8x32xf32>
    %83 = arith.negf %82 : vector<8x32xf32>
    %84 = math.exp %83 : vector<8x32xf32>
    %cst_25 = arith.constant 1.000000e+00 : f32
    %85 = vector.broadcast %cst_25 : f32 to vector<8x32xf32>
    %86 = arith.addf %85, %84 : vector<8x32xf32>
    %87 = arith.divf %85, %86 : vector<8x32xf32>
    %88 = vector.extract_strided_slice %81 {offsets = [0, 32], sizes = [8, 32], strides = [1, 1]} : vector<8x128xf32> to vector<8x32xf32>
    %89 = arith.negf %88 : vector<8x32xf32>
    %90 = math.exp %89 : vector<8x32xf32>
    %cst_26 = arith.constant 1.000000e+00 : f32
    %91 = vector.broadcast %cst_26 : f32 to vector<8x32xf32>
    %92 = arith.addf %91, %90 : vector<8x32xf32>
    %93 = arith.divf %91, %92 : vector<8x32xf32>
    %94 = vector.extract_strided_slice %81 {offsets = [0, 64], sizes = [8, 32], strides = [1, 1]} : vector<8x128xf32> to vector<8x32xf32>
    %95 = math.tanh %94 : vector<8x32xf32>
    %96 = vector.extract_strided_slice %81 {offsets = [0, 96], sizes = [8, 32], strides = [1, 1]} : vector<8x128xf32> to vector<8x32xf32>
    %97 = arith.negf %96 : vector<8x32xf32>
    %98 = math.exp %97 : vector<8x32xf32>
    %cst_27 = arith.constant 1.000000e+00 : f32
    %99 = vector.broadcast %cst_27 : f32 to vector<8x32xf32>
    %100 = arith.addf %99, %98 : vector<8x32xf32>
    %101 = arith.divf %99, %100 : vector<8x32xf32>
    %102 = arith.mulf %93, %69 : vector<8x32xf32>
    %103 = arith.mulf %87, %95 : vector<8x32xf32>
    %104 = arith.addf %102, %103 : vector<8x32xf32>
    %105 = math.tanh %104 : vector<8x32xf32>
    %106 = arith.mulf %101, %105 : vector<8x32xf32>
    %107 = arith.index_cast %c2_i32 : i32 to index
    %c0_28 = arith.constant 0 : index
    %c0_29 = arith.constant 0 : index
    %108 = vector.load %arg4[%107, %c0_28, %c0_29] : memref<4x8x32xf32, #tpu.memory_space<vmem>>, vector<1x8x32xf32>
    %109 = vector.shape_cast %108 : vector<1x8x32xf32> to vector<8x32xf32>
    %110 = vector.shape_cast %106 : vector<8x32xf32> to vector<1x8x32xf32>
    tpu.vector_store %arg4[%107, %c0_28, %c0_29], %110 {strides = array<i32>} : memref<4x8x32xf32, #tpu.memory_space<vmem>>, vector<1x8x32xf32>,
    %c3_i32 = arith.constant 3 : i32
    %111 = arith.index_cast %c3_i32 : i32 to index
    %c0_30 = arith.constant 0 : index
    %c0_31 = arith.constant 0 : index
    %112 = vector.load %arg2[%111, %c0_30, %c0_31] : memref<4x8x128xf32, #tpu.memory_space<vmem>>, vector<1x8x128xf32>
    %113 = vector.shape_cast %112 : vector<1x8x128xf32> to vector<8x128xf32>
    %114 = arith.truncf %106 : vector<8x32xf32> to vector<8x32xbf16>
    %cst_32 = arith.constant dense<0.000000e+00> : vector<8x128xf32>
    %115 = tpu.matmul %114, %3, %cst_32 {dimension_numbers = #tpu.dot_dimension_numbers<[1], [0], [0], [1], [0, 0, 1, 1], [], []>} : vector<8x32xbf16>, vector<32x128xbf16>, vector<8x128xf32> -> vector<8x128xf32>
    %116 = arith.addf %113, %115 : vector<8x128xf32>
    %117 = vector.extract_strided_slice %116 {offsets = [0, 0], sizes = [8, 32], strides = [1, 1]} : vector<8x128xf32> to vector<8x32xf32>
    %118 = arith.negf %117 : vector<8x32xf32>
    %119 = math.exp %118 : vector<8x32xf32>
    %cst_33 = arith.constant 1.000000e+00 : f32
    %120 = vector.broadcast %cst_33 : f32 to vector<8x32xf32>
    %121 = arith.addf %120, %119 : vector<8x32xf32>
    %122 = arith.divf %120, %121 : vector<8x32xf32>
    %123 = vector.extract_strided_slice %116 {offsets = [0, 32], sizes = [8, 32], strides = [1, 1]} : vector<8x128xf32> to vector<8x32xf32>
    %124 = arith.negf %123 : vector<8x32xf32>
    %125 = math.exp %124 : vector<8x32xf32>
    %cst_34 = arith.constant 1.000000e+00 : f32
    %126 = vector.broadcast %cst_34 : f32 to vector<8x32xf32>
    %127 = arith.addf %126, %125 : vector<8x32xf32>
    %128 = arith.divf %126, %127 : vector<8x32xf32>
    %129 = vector.extract_strided_slice %116 {offsets = [0, 64], sizes = [8, 32], strides = [1, 1]} : vector<8x128xf32> to vector<8x32xf32>
    %130 = math.tanh %129 : vector<8x32xf32>
    %131 = vector.extract_strided_slice %116 {offsets = [0, 96], sizes = [8, 32], strides = [1, 1]} : vector<8x128xf32> to vector<8x32xf32>
    %132 = arith.negf %131 : vector<8x32xf32>
    %133 = math.exp %132 : vector<8x32xf32>
    %cst_35 = arith.constant 1.000000e+00 : f32
    %134 = vector.broadcast %cst_35 : f32 to vector<8x32xf32>
    %135 = arith.addf %134, %133 : vector<8x32xf32>
    %136 = arith.divf %134, %135 : vector<8x32xf32>
    %137 = arith.mulf %128, %104 : vector<8x32xf32>
    %138 = arith.mulf %122, %130 : vector<8x32xf32>
    %139 = arith.addf %137, %138 : vector<8x32xf32>
    %140 = math.tanh %139 : vector<8x32xf32>
    %141 = arith.mulf %136, %140 : vector<8x32xf32>
    %142 = arith.index_cast %c3_i32 : i32 to index
    %c0_36 = arith.constant 0 : index
    %c0_37 = arith.constant 0 : index
    %143 = vector.load %arg4[%142, %c0_36, %c0_37] : memref<4x8x32xf32, #tpu.memory_space<vmem>>, vector<1x8x32xf32>
    %144 = vector.shape_cast %143 : vector<1x8x32xf32> to vector<8x32xf32>
    %145 = vector.shape_cast %141 : vector<8x32xf32> to vector<1x8x32xf32>
    tpu.vector_store %arg4[%142, %c0_36, %c0_37], %145 {strides = array<i32>} : memref<4x8x32xf32, #tpu.memory_space<vmem>>, vector<1x8x32xf32>,
    %c4_i32 = arith.constant 4 : i32
    %c0_38 = arith.constant 0 : index
    %c0_39 = arith.constant 0 : index
    %146 = vector.load %arg7[%c0_38, %c0_39] : memref<8x32xf32, #tpu.memory_space<vmem>>, vector<8x32xf32>
    tpu.vector_store %arg7[%c0_38, %c0_39], %141 {strides = array<i32>} : memref<8x32xf32, #tpu.memory_space<vmem>>, vector<8x32xf32>,
    %c0_40 = arith.constant 0 : index
    %c0_41 = arith.constant 0 : index
    %147 = vector.load %arg8[%c0_40, %c0_41] : memref<8x32xf32, #tpu.memory_space<vmem>>, vector<8x32xf32>
    tpu.vector_store %arg8[%c0_40, %c0_41], %139 {strides = array<i32>} : memref<8x32xf32, #tpu.memory_space<vmem>>, vector<8x32xf32>,
    %c1_i32_42 = arith.constant 1 : i32
    %148 = arith.cmpi eq, %arg1, %c1_i32_42 : i32
    %149 = arith.extui %148 : i1 to i32
    %c0_i32_43 = arith.constant 0 : i32
    %150 = arith.cmpi ne, %149, %c0_i32_43 : i32
    scf.if %150 {
      %c0_44 = arith.constant 0 : index
      %c0_45 = arith.constant 0 : index
      %c0_46 = arith.constant 0 : index
      %151 = vector.load %arg5[%c0_44, %c0_45, %c0_46] : memref<1x8x32xf32, #tpu.memory_space<vmem>>, vector<1x8x32xf32>
      %152 = vector.shape_cast %151 : vector<1x8x32xf32> to vector<8x32xf32>
      %153 = vector.shape_cast %141 : vector<8x32xf32> to vector<1x8x32xf32>
      tpu.vector_store %arg5[%c0_44, %c0_45, %c0_46], %153 {strides = array<i32>} : memref<1x8x32xf32, #tpu.memory_space<vmem>>, vector<1x8x32xf32>,
      %c0_47 = arith.constant 0 : index
      %c0_48 = arith.constant 0 : index
      %c0_49 = arith.constant 0 : index
      %154 = vector.load %arg6[%c0_47, %c0_48, %c0_49] : memref<1x8x32xf32, #tpu.memory_space<vmem>>, vector<1x8x32xf32>
      %155 = vector.shape_cast %154 : vector<1x8x32xf32> to vector<8x32xf32>
      %156 = vector.shape_cast %139 : vector<8x32xf32> to vector<1x8x32xf32>
      tpu.vector_store %arg6[%c0_47, %c0_48, %c0_49], %156 {strides = array<i32>} : memref<1x8x32xf32, #tpu.memory_space<vmem>>, vector<1x8x32xf32>,
    } else {
    }
    return
  }
  func.func @transform_0(%arg0: i32, %arg1: i32) -> (i32, i32, i32) {
    %c0_i32 = arith.constant 0 : i32
    %c0_i32_0 = arith.constant 0 : i32
    return %arg1, %arg0, %c0_i32 : i32, i32, i32
  }
  func.func @transform_1(%arg0: i32, %arg1: i32) -> (i32, i32) {
    %c0_i32 = arith.constant 0 : i32
    %c0_i32_0 = arith.constant 0 : i32
    %c0_i32_1 = arith.constant 0 : i32
    return %c0_i32, %c0_i32_0 : i32, i32
  }
  func.func @transform_2(%arg0: i32, %arg1: i32) -> (i32, i32, i32) {
    %c0_i32 = arith.constant 0 : i32
    %c0_i32_0 = arith.constant 0 : i32
    return %arg1, %arg0, %c0_i32 : i32, i32, i32
  }
  func.func @transform_3(%arg0: i32, %arg1: i32) -> (i32, i32, i32) {
    %c0_i32 = arith.constant 0 : i32
    %c0_i32_0 = arith.constant 0 : i32
    %c0_i32_1 = arith.constant 0 : i32
    return %c0_i32, %arg0, %c0_i32_0 : i32, i32, i32
  }
  func.func @transform_4(%arg0: i32, %arg1: i32) -> (i32, i32, i32) {
    %c0_i32 = arith.constant 0 : i32
    %c0_i32_0 = arith.constant 0 : i32
    %c0_i32_1 = arith.constant 0 : i32
    return %c0_i32, %arg0, %c0_i32_0 : i32, i32, i32
  }
}

</mosaic_0001>

<bundles_post_ra>
// kernel: tpu_custom_call.1
= control target key start
LH: loop header
LB: loop body
LE: loop exit
PB: predicated region body
PF: predicated region fallthrough
CT: control target
= control target key end

     0   :  { %s1487_s0 = inlined_call_operand.hbm [shape: f32[8,8,128], index: 0, kind: input, shape index: {}]   ;;  %s1488_s1 = inlined_call_operand.hbm [shape: bf16[32,128], index: 1, kind: input, shape index: {}]   ;;  %s1489_s2 = inlined_call_operand.hbm [shape: f32[8,8,32], index: 2, kind: output, shape index: {0}]   ;;  %s1490_s3 = inlined_call_operand.hbm [shape: f32[1,8,32], index: 3, kind: output, shape index: {1}]   ;;  %s1491_s4 = inlined_call_operand.hbm [shape: f32[1,8,32], index: 4, kind: output, shape index: {2}]  }
   0x1   :  { %1495 = sst [smem:[#allocation18_spill]] %s1488_s1 }
   0x2   :  { %10 = vsyncpa [#allocation5], 0 }
   0x3   :  { %12 = vsyncpa [#allocation5 + $0x1], 0 }
   0x4   :  { %13 = vsyncpa [#allocation8], 0 }
   0x5   :  { %14 = vsyncpa [#allocation6], 0 }
   0x6   :  { %16 = vsyncpa [#allocation6 + $0x1], 0 }
   0x7   :  { %17 = vsyncpa [#allocation11], 0  ;;  %s1227_s15 = smov 0   ;;  %s1229_s16 = smov 0  }
   0x8   :  { %s1231_s17 = smov 0   ;;  %s1233_s18 = smov 0  }
   0x9   :  { %s1235_s19 = smov 0   ;;  %s1237_s20 = smov 0  }
   0xa LB: > { %s775_s21 = sadd.s32 4294967295, %s1183_s20   ;;  %s776_s22 = sadd.s32 4294967294, %s1183_s20   ;;  %s1183_s20 = sphi %s1237_s20, %s23_s20   ;;  %s1179_s19 = sphi %s1235_s19, %s1516_s19   ;;  %s1175_s18 = sphi %s1233_s18, %s1515_s18   ;;  %s1171_s17 = sphi %s1231_s17, %s1514_s17   ;;  %s1167_s16 = sphi %s1229_s16, %s1513_s16   ;;  %s1163_s15 = sphi %s1227_s15, %s1512_s15  }
   0xb   : > { %p57_p0 = scmp.ne.s32.totalorder %s1167_s16, %s1163_s15  ;;  %p1261_p1 = scmp.eq.s32.totalorder %s775_s21, 0 }
   0xc   : > { %p1265_p2 = scmp.eq.s32.totalorder %s775_s21, 1  ;;  %p110_p3 = scmp.eq.s32.totalorder %s776_s22, 1 }
   0xd   : > { %p1271_p4 = por %p1261_p1, %p57_p0  ;;  %p777_p5 = scmp.ge.s32.totalorder %s1183_s20, 1 }
   0xe   : > { %p1276_p6 = por %p110_p3, %p57_p0  ;;  %p169_p7 = scmp.lt.s32.totalorder %s1183_s20, 3 }
   0xf   : > { %s1498_s25 = scalar_select %p1271_p4, 1, 0 }
  0x10   : > { %s1499_s26 = scalar_select %p1276_p6, 1, 0 }
  0x11   : > { %p1281_p8 = pnand %p777_p5, %p169_p7  ;;  %s1185_s28 = smov [#allocation7]  }
  0x12   : > { %s181_s29 = sshll.u32 %s1185_s28, 4  ;;  %s32_s5 = sadd.s32 1, %s1179_s19  ;;  %s182_s29 = int_to_ptr.vmem [resolvable:$true] %s181_s29 }
  0x13   : > { %p876_p9 = pneg %p1281_p8  ;;  %s1004_s6 = scalar_lea.vmem %s182_s29, 256 }
  0x14   : > { %p1005_p13 = scmp.ne.s32.totalorder %s182_s29, %s1004_s6  ;;  %p1012_p5 = scmp.lt.s32.totalorder %s182_s29, %s182_s29 }
  0x15   : > { %p1290_p11 = pnand %p876_p9, %p1261_p1  ;;  %p1013_p7 = scmp.lt.s32.totalorder %s1004_s6, %s1004_s6 }
  0x17   : > { %p995_p12 = pneg %p1290_p11  ;;  %p1014_p6 = por %p1013_p7, %p1012_p5 }
  0x19   : > { %p1007_p0 = pnand %p1005_p13, %p995_p12 }
  0x1b   : > { %p1008_p3 = pneg %p1007_p0 }
  0x1d   : > { %p1015_p4 = pnand %p1014_p6, %p1008_p3 }
  0x1f   : > { %1018 = shalt.err (!%p1015_p4)
}
  0x20   : > { %s1186_s7 = smov 64   ;;  %s1187_s8 = smov 4  }
  0x21   : > { %s1502_s1 = sld [smem:[#allocation18_spill]]  ;;  %p33_p6 = scmp.ge.s32.totalorder %s32_s5, 2 }
  0x22   : > { %s44_s11 = sadd.s32 1, %s1171_s17  ;;  %p51_p4 = scmp.ne.s32.totalorder %s1171_s17, %s1167_s16 }
  0x23   : > { %p52_p9 = scmp.eq.s32.totalorder %s1183_s20, 0  ;;  %s1518_s5 = smov (%p33_p6, %s32_s5), 0 }
  0x24   : > { %1503 = sst [smem:[#allocation17_spill]] %s1518_s5  ;;  %p1314_p13 = por %p1265_p2, %p51_p4 }
  0x25   : > { %p1308_p12 = por %p52_p9, %p51_p4  ;;  %s39_s14 = ssub.s32 %s1179_s19, %s1518_s5 }
  0x26   : > { %s1505_s13 = scalar_select %p1314_p13, 1, 0 }
  0x27   : > { %879 = dma.hbm_to_vmem [thread:$0]  (!%p1290_p11), %s1502_s1, 256, %s182_s29, [#allocation8], %s1186_s7, %s1186_s7, %s1187_s8  }
  0x28   : > { %p889_p0 = scmp.lt.s32.totalorder %s1183_s20, 2  ;;  %p42_p11 = scmp.eq.s32.totalorder %s39_s14, 0 }
  0x29   : > { %s195_s21 = sand.u32 1, %s1171_s17   ;;  %s814_s29 = sshll.u32 %s1179_s19, 9 }
  0x2a   : > { %s780_s22 = sshll.u32 %s195_s21, 5  ;;  %s206_s7 = scalar_lea.hbm %s1487_s0, %s814_s29 }
  0x2b   : > { %s1323_s28 = scalar_select %p42_p11, %s1171_s17, %s44_s11  }
  0x2c   : > { %s199_s8 = scalar_lea.vmem [#allocation4], %s780_s22  ;;  %p1331_p3 = pnand %p889_p0, %p1308_p12 }
  0x2d   : > { %s207_s9 = sshll.u32 %s199_s8, 4  ;;  %s196_s1 = scalar_lea.sflag [#allocation5], %s195_s21  ;;  %s208_s9 = int_to_ptr.vmem [resolvable:$true] %s207_s9 }
  0x2e   : > { %p1021_p5 = pneg %p1331_p3  ;;  %s1032_s14 = scalar_lea.vmem %s208_s9, 512 }
  0x2f   : > { %p1033_p7 = scmp.ne.s32.totalorder %s208_s9, %s1032_s14  ;;  %s1188_s11 = smov [#allocation4]  }
  0x30   : > { %s1037_s5 = sshll.u32 %s1188_s11, 4  ;;  %s1038_s5 = int_to_ptr.vmem [resolvable:$false] %s1037_s5 }
  0x31   : > { %p1035_p6 = pnand %p1033_p7, %p1021_p5  ;;  %s1039_s29 = scalar_lea.vmem %s1038_s5, 1024 }
  0x32   : > { %p1040_p9 = scmp.lt.s32.totalorder %s208_s9, %s1038_s5  ;;  %p1041_p11 = scmp.lt.s32.totalorder %s1039_s29, %s1032_s14 }
  0x33   : > { %p1036_p4 = pneg %p1035_p6 }
  0x34   : > { %p1042_p10 = por %p1041_p11, %p1040_p9 }
  0x36   : > { %p1043_p13 = pnand %p1042_p10, %p1036_p4 }
  0x38   : > { %1046 = shalt.err (!%p1043_p13)
}
  0x39   : > { %s1189_s12 = smov 128   ;;  %s1190_s22 = smov 8  }
  0x3a   : > { %883 = dma.hbm_to_vmem [thread:$0]  (!%p1331_p3), %s206_s7, 512, %s208_s9, %s196_s1, %s1189_s12, %s1189_s12, %s1190_s22  }
  0x3b   : > { %219 = sbr.rel (%p1281_p8) target bundleno = 2902 (0xb56), region = 28  ;;  %s1342_s21 = sand.u32 (!%p1281_p8), 1, %s1167_s16  }
  0x3c   : > { %s784_s30 = sshll.u32 (!%p1281_p8), %s1342_s21, 5  ;;  %s222_s5 = scalar_lea.sflag (!%p1281_p8), [#allocation5], %s1342_s21 }
  0x3d   : > { %s1346_s6 = scalar_lea.vmem (!%p1281_p8), [#allocation4], %s784_s30  ;;  %p1507_p10 = scmp.ne.s32.totalorder (!%p1281_p8), %s1498_s25, 0 }
  0x40   : > { %1146 = dma.done.wait (%p1507_p10), %s222_s5, 512  }
  0x41   : > { %1148 = vsyncadd (%p1507_p10), %s222_s5, 4294966784 }
  0x42   : > { %1150 = dma.done.wait (%p1261_p1), [#allocation8], 256  }
  0x43   : > { %1152 = vsyncadd (%p1261_p1), [#allocation8], 4294967040  ;;  %s1356_s1 = scalar_lea.vmem [#allocation9], %s784_s30  ;;  %p787_p8 = scmp.ne.s32.totalorder %s1175_s18, 0 }
  0x45   : > { %260 = sbr.rel (%p787_p8) target bundleno = 76 (0x4c), region = 40 }
  0x4a   : > { %vm261_vm0 = vcmask 261120   ;;  %v1191_v0 = vmov 0.0  }
  0x4b   : > { %262 = vst.msk [vmem:[#allocation2] sm:$0xff] %vm261_vm0, %v1191_v0  ;;  %263 = vst.msk [vmem:[#allocation3] sm:$0xff] %vm261_vm0, %v1191_v0 }
  0x4c PF: > { %v959_v1 = vld [vmem:[#allocation7 + $0x8] sm:$0xff]   ;;  %v1192_v2 = vmov 0.0   ;;  %v960_v3 = vld [vmem:[#allocation7] sm:$0xff]   ;;  %vm1193_vm1 = vmmov 0   ;;  %vm284_vm2 = vcmask 261120   ;;  %s1194_s23 = smov 64  }
  0x4d   : > { %828 = vmatprep.subr.bf16.mxu0 %v1192_v2  ;;  %836 = vmatprep.subr.bf16.mxu1 %v1192_v2  ;;  %v270_v6 = vld [vmem:[%s1346_s6] sm:$0xff]  ;;  %s1195_s25 = smov 32   ;;  %v792_v29 = vld [vmem:[%s1346_s6 + $0x8] sm:$0xff]  ;;  %v796_v50 = vld [vmem:[%s1346_s6 + $0x10] sm:$0xff]  ;;  %s1196_s27 = smov 96  }
  0x4e   : > { %829 = vmatpush3.bf16.msra.mxu0 %v959_v1  ;;  %832 = vmatprep.mubr.msk.bf16.mxu0 %vm1193_vm1, %v1192_v2  ;;  %p804_p1 = scmp.ne.s32.totalorder %s1175_s18, 1 }
  0x4f   : > { %830 = vmatprep.subr.bf16.mxu0 %v1192_v2  ;;  %837 = vmatpush3.bf16.msra.mxu1 %v959_v1 }
  0x50   : > { %838 = vmatprep.subr.bf16.mxu1 %v1192_v2  ;;  %840 = vmatprep.mubr.msk.bf16.mxu1 %vm1193_vm1, %v1192_v2 }
  0x52   : > { %v268_v4 = vld [vmem:[#allocation2] sm:$0xff]  ;;  %831 = vmatpush3.bf16.msra.mxu0 %v960_v3  ;;  %v269_v13 = vld [vmem:[#allocation3] sm:$0xff] }
  0x53   : > { %v271_v5 = vpack.c.bf16 %v268_v4, %v268_v4  ;;  %839 = vmatpush3.bf16.msra.mxu1 %v960_v3  ;;  %844 = vmatprep.subr.bf16.mxu0 %v1192_v2 }
  0x54   : > { %852 = vmatprep.subr.bf16.mxu1 %v1192_v2 }
  0x55   : > { %833 = vmatmul.mubr.msk.bf16.vlgmr.msra.gmra.mxu0 %vm284_vm2, %v271_v5 }
  0x56   : > { %845 = vmatpush3.bf16.msra.mxu0 %v959_v1  ;;  %848 = vmatprep.mubr.msk.bf16.mxu0 %vm1193_vm1, %v1192_v2 }
  0x57   : > { %846 = vmatprep.subr.bf16.mxu0 %v1192_v2 }
  0x5a   : > { %847 = vmatpush3.bf16.msra.mxu0 %v960_v3 }
 0x115   : > { %v322_v7 = vpop.f32.mrf.mxu0 }
 0x116   : > { %v328_v8 = vadd.f32 %v322_v7, %v270_v6  ;;  %v800_v7 = vld [vmem:[%s1346_s6 + $0x18] sm:$0xff] }
 0x117   : > { %v834_v9 = vpop.f32.mrf.mxu0 }
 0x118   : > { %961 = vtanh.f32 %v328_v8  ;;  %v791_v14 = vmul.f32 -1.442695, %v328_v8 }
 0x119   : > { %v325_v10 = vpop.f32.mrf.mxu0 }
 0x11a   : > { %963 = vpow2.f32 %v791_v14 }
 0x11b   : > { %v835_v11 = vpop.f32.mrf.mxu0 }
 0x125   : > { %v962_v12 = vpop.eup %961 }
 0x126   : > { %342 = vrot.lane.b32.xlu0 %v962_v12, %s1194_s23 }
 0x127   : > { %v964_v15 = vpop.eup %963 }
 0x128   : > { %v332_v16 = vadd.f32 1.0, %v964_v15 }
 0x12a   : > { %337 = vrot.lane.b32.xlu0 %v269_v13, %s1195_s25  ;;  %965 = vrcp.f32 %v332_v16 }
 0x137   : > { %v966_v17 = vpop.eup %965 }
 0x198   : > { %v343_v18 = vpop.permute.xlu0 %342 }
 0x199   : > { %v345_v19 = vmul.f32 %v966_v17, %v343_v18 }
 0x19b   : > { %347 = vrot.lane.b32.xlu1 %v345_v19, %s1195_s25 }
 0x19c   : > { %v338_v20 = vpop.permute.xlu0 %337 }
 0x19d   : > { %v340_v21 = vmul.f32 %v966_v17, %v338_v20 }
 0x20d   : > { %v348_v22 = vpop.permute.xlu1 %347 }
 0x20e   : > { %v350_v23 = vadd.f32 %v348_v22, %v340_v21 }
 0x210   : > { %967 = vtanh.f32 %v350_v23 }
 0x21d   : > { %v968_v24 = vpop.eup %967 }
 0x21e   : > { %353 = vrot.lane.b32.xlu1 %v968_v24, %s1194_s23 }
 0x290   : > { %v354_v25 = vpop.permute.xlu1 %353 }
 0x291   : > { %v1368_v26 = vmul.f32 %v966_v17, %v354_v25 }
 0x293   : > { %v364_v27 = vpack.c.bf16 %v1368_v26, %v1368_v26 }
 0x295   : > { %366 = vrot.lane.b32.xlu0 %v364_v27, %s1195_s25 }
 0x307   : > { %v367_v28 = vpop.permute.xlu0 %366 }
 0x308   : > { %841 = vmatmul.mubr.msk.bf16.vlgmr.msra.gmra.mxu1 %vm284_vm2, %v367_v28 }
 0x309   : > { %853 = vmatpush3.bf16.msra.mxu1 %v959_v1  ;;  %856 = vmatprep.mubr.msk.bf16.mxu1 %vm1193_vm1, %v1192_v2 }
 0x30a   : > { %854 = vmatprep.subr.bf16.mxu1 %v1192_v2 }
 0x30d   : > { %855 = vmatpush3.bf16.msra.mxu1 %v960_v3 }
 0x3c8   : > { %v405_v30 = vpop.f32.mrf.mxu1 }
 0x3c9   : > { %v411_v31 = vadd.f32 %v792_v29, %v405_v30 }
 0x3ca   : > { %v842_v32 = vpop.f32.mrf.mxu1 }
 0x3cb   : > { %969 = vtanh.f32 %v411_v31  ;;  %v794_v36 = vmul.f32 -1.442695, %v411_v31 }
 0x3cc   : > { %v408_v33 = vpop.f32.mrf.mxu1 }
 0x3cd   : > { %971 = vpow2.f32 %v794_v36 }
 0x3ce   : > { %v843_v34 = vpop.f32.mrf.mxu1 }
 0x3d8   : > { %v970_v35 = vpop.eup %969 }
 0x3d9   : > { %421 = vrot.lane.b32.xlu1 %v970_v35, %s1194_s23 }
 0x3da   : > { %v972_v37 = vpop.eup %971 }
 0x3db   : > { %v415_v38 = vadd.f32 1.0, %v972_v37 }
 0x3dd   : > { %973 = vrcp.f32 %v415_v38 }
 0x3ea   : > { %v974_v39 = vpop.eup %973 }
 0x3eb   : > { %v419_v42 = vmul.f32 %v974_v39, %v350_v23 }
 0x44b   : > { %v422_v40 = vpop.permute.xlu1 %421 }
 0x44c   : > { %v424_v41 = vmul.f32 %v974_v39, %v422_v40 }
 0x44e   : > { %426 = vrot.lane.b32.xlu0 %v424_v41, %s1195_s25 }
 0x4c0   : > { %v427_v43 = vpop.permute.xlu0 %426 }
 0x4c1   : > { %v429_v44 = vadd.f32 %v427_v43, %v419_v42 }
 0x4c3   : > { %975 = vtanh.f32 %v429_v44 }
 0x4d0   : > { %v976_v45 = vpop.eup %975 }
 0x4d1   : > { %432 = vrot.lane.b32.xlu1 %v976_v45, %s1194_s23 }
 0x543   : > { %v433_v46 = vpop.permute.xlu1 %432 }
 0x544   : > { %v1379_v47 = vmul.f32 %v974_v39, %v433_v46 }
 0x546   : > { %v444_v48 = vpack.c.bf16 %v1379_v47, %v1379_v47 }
 0x548   : > { %446 = vrot.lane.b32.xlu0 %v444_v48, %s1195_s25 }
 0x5ba   : > { %v447_v49 = vpop.permute.xlu0 %446 }
 0x5bb   : > { %849 = vmatmul.mubr.msk.bf16.vlgmr.msra.gmra.mxu0 %vm284_vm2, %v447_v49 }
 0x67b   : > { %v485_v51 = vpop.f32.mrf.mxu0 }
 0x67c   : > { %v491_v52 = vadd.f32 %v796_v50, %v485_v51 }
 0x67d   : > { %v850_v53 = vpop.f32.mrf.mxu0 }
 0x67e   : > { %977 = vtanh.f32 %v491_v52  ;;  %v798_v57 = vmul.f32 -1.442695, %v491_v52 }
 0x67f   : > { %v488_v54 = vpop.f32.mrf.mxu0 }
 0x680   : > { %979 = vpow2.f32 %v798_v57 }
 0x681   : > { %v851_v55 = vpop.f32.mrf.mxu0 }
 0x68b   : > { %v978_v56 = vpop.eup %977 }
 0x68c   : > { %501 = vrot.lane.b32.xlu1 %v978_v56, %s1194_s23 }
 0x68d   : > { %v980_v58 = vpop.eup %979 }
 0x68e   : > { %v495_v59 = vadd.f32 1.0, %v980_v58 }
 0x690   : > { %981 = vrcp.f32 %v495_v59 }
 0x69d   : > { %v982_v60 = vpop.eup %981 }
 0x69e   : > { %v499_v63 = vmul.f32 %v982_v60, %v429_v44 }
 0x6fe   : > { %v502_v61 = vpop.permute.xlu1 %501 }
 0x6ff   : > { %v504_v62 = vmul.f32 %v982_v60, %v502_v61 }
 0x701   : > { %506 = vrot.lane.b32.xlu0 %v504_v62, %s1195_s25 }
 0x773   : > { %v507_v0 = vpop.permute.xlu0 %506 }
 0x774   : > { %v509_v1 = vadd.f32 %v507_v0, %v499_v63 }
 0x776   : > { %983 = vtanh.f32 %v509_v1 }
 0x783   : > { %v984_v2 = vpop.eup %983 }
 0x784   : > { %512 = vrot.lane.b32.xlu1 %v984_v2, %s1194_s23 }
 0x7f6   : > { %v513_v3 = vpop.permute.xlu1 %512 }
 0x7f7   : > { %v515_v4 = vmul.f32 %v982_v60, %v513_v3 }
 0x7f9   : > { %v524_v5 = vpack.c.bf16 %v515_v4, %v515_v4 }
 0x7fb   : > { %526 = vrot.lane.b32.xlu0 %v524_v5, %s1195_s25 }
 0x86d   : > { %v527_v6 = vpop.permute.xlu0 %526 }
 0x86e   : > { %857 = vmatmul.mubr.msk.bf16.vlgmr.msra.gmra.mxu1 %vm284_vm2, %v527_v6 }
 0x92e   : > { %v565_v8 = vpop.f32.mrf.mxu1 }
 0x92f   : > { %v571_v9 = vadd.f32 %v800_v7, %v565_v8 }
 0x930   : > { %v858_v10 = vpop.f32.mrf.mxu1 }
 0x931   : > { %985 = vtanh.f32 %v571_v9  ;;  %v802_v14 = vmul.f32 -1.442695, %v571_v9 }
 0x932   : > { %v568_v11 = vpop.f32.mrf.mxu1 }
 0x933   : > { %987 = vpow2.f32 %v802_v14 }
 0x934   : > { %v859_v12 = vpop.f32.mrf.mxu1 }
 0x93e   : > { %v986_v13 = vpop.eup %985 }
 0x93f   : > { %581 = vrot.lane.b32.xlu1 %v986_v13, %s1194_s23 }
 0x940   : > { %v988_v15 = vpop.eup %987 }
 0x941   : > { %v575_v16 = vadd.f32 1.0, %v988_v15 }
 0x943   : > { %989 = vrcp.f32 %v575_v16 }
 0x950   : > { %v990_v17 = vpop.eup %989 }
 0x951   : > { %v579_v20 = vmul.f32 %v990_v17, %v509_v1 }
 0x9b1   : > { %v582_v18 = vpop.permute.xlu1 %581 }
 0x9b2   : > { %v584_v19 = vmul.f32 %v990_v17, %v582_v18 }
 0x9b4   : > { %586 = vrot.lane.b32.xlu0 %v584_v19, %s1195_s25 }
 0x9b8   : > { %358 = vrot.lane.b32.xlu0 %v1368_v26, %s1195_s25 }
 0x9bc   : > { %517 = vrot.lane.b32.xlu0 %v515_v4, %s1195_s25 }
 0xa26   : > { %v587_v21 = vpop.permute.xlu0 %586 }
 0xa27   : > { %v589_v22 = vadd.f32 %v587_v21, %v579_v20 }
 0xa29   : > { %991 = vtanh.f32 %v589_v22  ;;  %604 = vrot.lane.b32.xlu0 %v589_v22, %s1196_s27 }
 0xa2a   : > { %v359_v23 = vpop.permute.xlu0 %358 }
 0xa2b   : > { %361 = vst.msk [vmem:[%s1356_s1] sm:$0xff] %vm284_vm2, %v359_v23 }
 0xa2e   : > { %v518_v24 = vpop.permute.xlu0 %517 }
 0xa2f   : > { %799 = vst.msk [vmem:[%s1356_s1 + $0x10] sm:$0xff] %vm284_vm2, %v518_v24 }
 0xa36   : > { %v992_v25 = vpop.eup %991 }
 0xa37   : > { %592 = vrot.lane.b32.xlu1 %v992_v25, %s1194_s23 }
 0xa3b   : > { %437 = vrot.lane.b32.xlu1 %v1379_v47, %s1195_s25 }
 0xa9b   : > { %v605_v26 = vpop.permute.xlu0 %604 }
 0xa9c   : > { %607 = vst.msk [vmem:[#allocation3] sm:$0xff] %vm284_vm2, %v605_v26 }
 0xaa9   : > { %v593_v27 = vpop.permute.xlu1 %592 }
 0xaaa   : > { %v595_v28 = vmul.f32 %v990_v17, %v593_v27 }
 0xaac   : > { %597 = vrot.lane.b32.xlu1 %v595_v28, %s1195_s25 }
 0xaad   : > { %v438_v29 = vpop.permute.xlu1 %437 }
 0xaae   : > { %795 = vst.msk [vmem:[%s1356_s1 + $0x8] sm:$0xff] %vm284_vm2, %v438_v29 }
 0xb1b   : > { %611 = sbr.rel (%p804_p1) target bundleno = 2849 (0xb21), region = 44 }
 0xb1e   : > { %v598_v30 = vpop.permute.xlu1 %597 }
 0xb1f   : > { %803 = vst.msk [vmem:[%s1356_s1 + $0x18] sm:$0xff] %vm284_vm2, %v598_v30  ;;  %602 = vst.msk [vmem:[#allocation2] sm:$0xff] %vm284_vm2, %v598_v30 }
 0xb20   : > { %612 = vst.msk [vmem:[#allocation10] sm:$0xff] %vm284_vm2, %v598_v30  ;;  %613 = vst.msk [vmem:[#allocation12] sm:$0xff] %vm284_vm2, %v605_v26 }
 0xb21 PF: > { %s1197_s7 = smov [#allocation10]   ;;  %s815_s9 = sshll.u32 %s1175_s18, 9 }
 0xb22   : > { %s645_s8 = sshll.u32 %s1197_s7, 4  ;;  %s646_s8 = int_to_ptr.vmem [resolvable:$true] %s645_s8 }
 0xb23   : > { %s1047_s10 = scalar_lea.vmem %s646_s8, 128  ;;  %p1054_p3 = scmp.lt.s32.totalorder %s646_s8, %s646_s8 }
 0xb24   : > { %p1048_p12 = scmp.ne.s32.totalorder %s646_s8, %s1047_s10  ;;  %p1055_p5 = scmp.lt.s32.totalorder %s1047_s10, %s1047_s10 }
 0xb26   : > { %p1049_p13 = pnand %p1048_p12, %p1265_p2  ;;  %p1056_p7 = por %p1055_p5, %p1054_p3 }
 0xb28   : > { %p1050_p0 = pneg %p1049_p13 }
 0xb2a   : > { %p1057_p6 = pnand %p1056_p7, %p1050_p0 }
 0xb2c   : > { %1060 = shalt.err (!%p1057_p6)
}
 0xb2d   : > { %868 = dma.vmem_to_hbm [thread:$0]  (%p1265_p2), %s646_s8, 128, %s1490_s3, [#allocation11]  }
 0xb2e   : > { %s1425_s12 = scalar_lea.hbm %s1489_s2, %s815_s9  ;;  %s629_s22 = sshll.u32 %s1356_s1, 4  ;;  %s1428_s22 = int_to_ptr.vmem [resolvable:$true] %s629_s22 }
 0xb2f   : > { %s615_s30 = scalar_lea.sflag [#allocation6], %s1342_s21  ;;  %s1071_s5 = scalar_lea.vmem %s1428_s22, 512 }
 0xb30   : > { %p1072_p4 = scmp.ne.s32.totalorder %s1428_s22, %s1071_s5  ;;  %p1508_p9 = scmp.ne.s32.totalorder %s1505_s13, 0 }
 0xb31   : > { %s1198_s6 = smov [#allocation9]  }
 0xb32   : > { %p1073_p11 = pnand %p1072_p4, %p1508_p9  ;;  %s1075_s23 = sshll.u32 %s1198_s6, 4  ;;  %s1076_s23 = int_to_ptr.vmem [resolvable:$false] %s1075_s23 }
 0xb33   : > { %s1077_s25 = scalar_lea.vmem %s1076_s23, 1024  ;;  %p1078_p8 = scmp.lt.s32.totalorder %s1428_s22, %s1076_s23 }
 0xb34   : > { %p1074_p10 = pneg %p1073_p11  ;;  %p1079_p1 = scmp.lt.s32.totalorder %s1077_s25, %s1071_s5 }
 0xb36   : > { %p1080_p12 = por %p1079_p1, %p1078_p8 }
 0xb38   : > { %p1081_p13 = pnand %p1080_p12, %p1074_p10 }
 0xb3a   : > { %1084 = shalt.err (!%p1081_p13)
}
 0xb3b   : > { %s1085_s1 = scalar_lea.hbm %s1425_s12, 512  ;;  %s1089_s8 = scalar_lea.hbm %s1489_s2, 1024 }
 0xb3c   : > { %p1086_p0 = scmp.ne.s32.totalorder %s1425_s12, %s1085_s1  ;;  %p1090_p7 = scmp.lt.s32.totalorder %s1425_s12, %s1489_s2 }
 0xb3d   : > { %p1091_p6 = scmp.lt.s32.totalorder %s1089_s8, %s1085_s1 }
 0xb3e   : > { %p1087_p3 = pnand %p1086_p0, %p1508_p9 }
 0xb3f   : > { %p1092_p4 = por %p1091_p6, %p1090_p7 }
 0xb40   : > { %p1088_p5 = pneg %p1087_p3 }
 0xb42   : > { %p1093_p11 = pnand %p1092_p4, %p1088_p5 }
 0xb44   : > { %1096 = shalt.err (!%p1093_p11)
}
 0xb45   : > { %s1199_s14 = smov 128   ;;  %s1200_s11 = smov 8  }
 0xb46   : > { %866 = dma.vmem_to_hbm [thread:$0]  (%p1508_p9), %s1428_s22, 512, %s1425_s12, %s615_s30, %s1199_s14, %s1199_s14, %s1200_s11  }
 0xb47   : > { %s1201_s18 = smov [#allocation12]  }
 0xb48   : > { %s658_s29 = sshll.u32 %s1201_s18, 4  ;;  %s659_s29 = int_to_ptr.vmem [resolvable:$true] %s658_s29 }
 0xb49   : > { %s1097_s5 = scalar_lea.vmem %s659_s29, 128  ;;  %p1104_p12 = scmp.lt.s32.totalorder %s659_s29, %s659_s29 }
 0xb4a   : > { %p1098_p10 = scmp.ne.s32.totalorder %s659_s29, %s1097_s5  ;;  %p1105_p13 = scmp.lt.s32.totalorder %s1097_s5, %s1097_s5 }
 0xb4c   : > { %p1099_p8 = pnand %p1098_p10, %p1265_p2  ;;  %p1106_p0 = por %p1105_p13, %p1104_p12 }
 0xb4e   : > { %p1100_p1 = pneg %p1099_p8 }
 0xb50   : > { %p1107_p3 = pnand %p1106_p0, %p1100_p1 }
 0xb52   : > { %1110 = shalt.err (!%p1107_p3)
}
 0xb53   : > { %870 = dma.vmem_to_hbm [thread:$0]  (%p1265_p2), %s659_s29, 128, %s1491_s4, [#allocation11]  }
 0xb54   : > { %1154 = dma.done.wait (%p1265_p2), [#allocation11], 256  }
 0xb55   : > { %1156 = vsyncadd (%p1265_p2), [#allocation11], 4294967040 }
 0xb56 PF: > { %s678_s13 = sand.u32 1, %s1163_s15   ;;  %p1509_p9 = scmp.ne.s32.totalorder %s1499_s26, 0 }
 0xb57   : > { %p1510_p5 = scmp.ge.s32.totalorder %s1183_s20, 2  ;;  %s679_s21 = scalar_lea.sflag [#allocation6], %s678_s13 }
 0xb59   : > { %p885_p7 = pnand %p1510_p5, %p1509_p9 }
 0xb5b   : > { %p886_p6 = pneg %p885_p7 }
 0xb5d   : > { %1158 = dma.done.wait (%p886_p6), %s679_s21, 512  }
 0xb5e   : > { %1160 = vsyncadd (%p886_p6), %s679_s21, 4294966784  ;;  %s23_s20 = sadd.s32 1, %s1183_s20   ;;  %s1511_s24 = sld [smem:[#allocation17_spill]] }
 0xb5f   : > { %p20_p4 = scmp.ge.s32.totalorder %s23_s20, 4   ;;  %s1512_s15 = smov %s1167_s16 }
 0xb60   : > { %s1513_s16 = smov %s1171_s17  ;;  %s1514_s17 = smov %s1323_s28 }
 0xb61   : > { %s1515_s18 = smov %s1179_s19  ;;  %22 = sbr.rel (!%p20_p4) target bundleno = 10 (0xa), region = 109 }
 0xb64   : > { %s1516_s19 = smov %s1511_s24 }
 0xb66   :  { %684 = vsyncpa [#allocation5], 1 }
 0xb67   :  { %686 = vsyncpa [#allocation5 + $0x1], 1 }
 0xb68   :  { %687 = vsyncpa [#allocation8], 1 }
 0xb69   :  { %688 = vsyncpa [#allocation6], 1 }
 0xb6a   :  { %690 = vsyncpa [#allocation6 + $0x1], 1 }
 0xb6b   :  { %691 = vsyncpa [#allocation11], 1 }

</bundles_post_ra>
